<compile_context>
chip_gen: v5e
topology: v5e:2x2
jax: 0.10.0
libtpu: 0.0.40
codegen_flags: <defaults>
</compile_context>

<pallas_src>
import jax
import jax.numpy as jnp
from jax.experimental import pallas as pl
from jax.experimental.pallas import tpu as pltpu


# =============================================================================
# Production path: metadata-only reshape (exactly torch .view on contiguous x).
# Zero HBM traffic, zero launch overhead.  Use this unless a fused op exists.
# =============================================================================
def unflatten(x, C=2, H=7, W=7, N=-1):
    n = x.shape[0] if N == -1 else N
    return x.reshape(n, C, H, W)


# =============================================================================
# Pallas fusion skeleton.
# =============================================================================
_KERNEL_BODY_IS_IDENTITY = True     # flip to False once a real fused op lands
_MIN_KERNEL_BYTES = 1 << 20         # below ~1 MiB the launch is pure overhead


def _copy_kernel(x_ref, o_ref):
    # TODO(synk): identity copy only -- replace with a fused op (bias/act/...)
    # to justify the HBM round trip, then set _KERNEL_BODY_IS_IDENTITY = False.
    o_ref[...] = x_ref[...]


def _chip_params():
    """Per-generation tile-size / VMEM budgeting.

    Four buffers are in flight (input + output, each double-buffered), so the
    VMEM footprint is ~4 x target_bytes.
    """
    try:
        kind = jax.devices()[0].device_kind.lower()
    except Exception:
        kind = ""
    if "v7" in kind:
        # 3.2 TB/s HBM -> big tiles hide the ~0.35us/step overhead.
        # 64 MiB physical VMEM but 32 MiB scoped default -> raise the limit.
        return dict(target_bytes=6 << 20, vmem_limit_bytes=48 << 20,
                    min_grid_steps=2)         # 2 TensorCores per chip
    if "v6" in kind:
        # 1.4 TB/s HBM, 32 MiB scoped / 128 MiB physical VMEM.
        return dict(target_bytes=4 << 20, vmem_limit_bytes=None,
                    min_grid_steps=1)
    # v5e and unknown chips: 16 MiB scoped-VMEM default -> stay conservative.
    return dict(target_bytes=2 << 20, vmem_limit_bytes=None, min_grid_steps=1)


def _pick_lane_dense_cols(batch, flat_dim, total):
    """Prefer a large multiple-of-128 last dim (unmasked vst).  If the element
    count is not 128-divisible, widen flat_dim by the largest divisor k of the
    batch with flat_dim*k <= 4096 so most lanes of each store stay live."""
    for cols in (4096, 2048, 1024, 512, 256, 128):
        if total % cols == 0:
            return cols
    kmax = max(1, 4096 // max(1, flat_dim))
    for k in range(min(kmax, batch), 0, -1):
        if batch % k == 0:
            return flat_dim * k
    return flat_dim


def _sublane_multiple(dtype):
    # f32 -> 8, bf16/f16 -> 16, int8/fp8 -> 32 (sub-32-bit packs along sublanes).
    return max(8, 32 // jnp.dtype(dtype).itemsize)


def _pick_row_tile(rows, cols, itemsize, target_bytes, sub, min_grid_steps):
    tn = max(sub, target_bytes // max(1, cols * itemsize))
    tn = max(sub, (tn // sub) * sub)        # sublane-aligned, dtype-aware
    if tn >= rows:
        tn = rows                           # single full-extent block
    # On multi-TC chips, make sure a >=1 MiB array gets >1 "parallel" step.
    if (min_grid_steps > 1 and rows * cols * itemsize >= _MIN_KERNEL_BYTES
            and rows > sub):
        while tn > sub and pl.cdiv(rows, tn) < min_grid_steps:
            tn = max(sub, ((tn // 2) // sub) * sub)
    return tn


def unflatten_pallas(x, C=2, H=7, W=7, N=-1, *, force_kernel=False,
                     tile_rows=None):
    """Pallas-backed Unflatten: (N, C*H*W) -> (N, C, H, W).

    With an identity body (current state) this falls back to the free reshape
    unless force_kernel=True.

    NOTE on aliasing: no input_output_aliases is requested.  Aliasing without
    donating x at the jit boundary does NOT elide the copy -- XLA inserts a
    defensive copy of x (a third full HBM pass).  If the caller donates x
    (jax.jit(..., donate_argnums=...)), input_output_aliases={0: 0} can be
    re-enabled to reuse x's HBM slab.
    """
    n = x.shape[0] if N == -1 else N
    flat_dim = C * H * W
    assert x.shape == (n, flat_dim), f"expected ({n}, {flat_dim}), got {x.shape}"

    total = n * flat_dim
    itemsize = jnp.dtype(x.dtype).itemsize

    # Short-circuit: identity body and/or tiny input -> metadata-only reshape.
    if not force_kernel and (_KERNEL_BODY_IS_IDENTITY
                             or total * itemsize < _MIN_KERNEL_BYTES):
        return x.reshape(n, C, H, W)

    params = _chip_params()
    cols = _pick_lane_dense_cols(n, flat_dim, total)
    rows = total // cols
    slab = x.reshape(rows, cols)            # metadata-only on contiguous input

    sub = _sublane_multiple(slab.dtype)
    if tile_rows is not None:               # test/override knob
        tn = min(int(tile_rows), rows)
    else:
        tn = _pick_row_tile(rows, cols, itemsize, params["target_bytes"],
                            sub, params["min_grid_steps"])
    grid = (pl.cdiv(rows, tn),)

    compiler_kwargs = dict(dimension_semantics=("parallel",))
    if params["vmem_limit_bytes"] is not None:
        compiler_kwargs["vmem_limit_bytes"] = params["vmem_limit_bytes"]

    out = pl.pallas_call(
        _copy_kernel,
        out_shape=jax.ShapeDtypeStruct((rows, cols), slab.dtype),
        grid=grid,
        in_specs=[pl.BlockSpec((tn, cols), lambda i: (i, 0))],
        out_specs=pl.BlockSpec((tn, cols), lambda i: (i, 0)),
        compiler_params=pltpu.CompilerParams(**compiler_kwargs),
        cost_estimate=pl.CostEstimate(flops=0, transcendentals=0,
                                      bytes_accessed=2 * total * itemsize),
    )(slab)

    # Pure metadata reshape (same as torch .view on contiguous memory).
    return out.reshape(n, C, H, W)


if __name__ == "__main__":
    key = jax.random.PRNGKey(0)

    # 1) Module defaults (N=2, C=2, H=7, W=7): production path -- short-circuit
    #    to the free reshape (kernel would be 100% overhead at 784 bytes).
    N, C, H, W = 2, 2, 7, 7
    x0 = jax.random.normal(key, (N, C * H * W), dtype=jnp.float32)
    y0 = jax.block_until_ready(unflatten_pallas(x0, C=C, H=H, W=W))
    assert y0.shape == (N, C, H, W) and y0.dtype == x0.dtype
    assert bool(jnp.all(y0 == x0.reshape(N, C, H, W)))

    # 2) Forced kernel on the non-128-divisible default feature size:
    #    exercises the lane-dense fallback (cols = flat_dim * k).
    y0k = jax.block_until_ready(
        unflatten_pallas(x0, C=C, H=H, W=W, force_kernel=True))
    assert y0k.shape == (N, C, H, W)
    assert bool(jnp.all(y0k == x0.reshape(N, C, H, W)))

    # 3) Forced kernel, lane-dense slab with a RAGGED final row tile
    #    (rows=10, tile_rows=8 -> grid of 2, masked last-block writeback).
    N, C, H, W = 40, 4, 16, 16
    x1 = jax.random.normal(jax.random.PRNGKey(0), (N, C * H * W), jnp.float32)
    y1 = jax.block_until_ready(
        unflatten_pallas(x1, C=C, H=H, W=W, force_kernel=True, tile_rows=8))
    assert y1.shape == (N, C, H, W)
    assert bool(jnp.all(y1 == x1.reshape(N, C, H, W)))

    # 4) bf16: dtype-aware sublane alignment path.
    N, C, H, W = 16, 4, 16, 16
    x2 = jax.random.normal(jax.random.PRNGKey(0),
                           (N, C * H * W)).astype(jnp.bfloat16)
    y2 = jax.block_until_ready(
        unflatten_pallas(x2, C=C, H=H, W=W, force_kernel=True))
    assert y2.shape == (N, C, H, W) and y2.dtype == jnp.bfloat16
    assert bool(jnp.all(y2 == x2.reshape(N, C, H, W)))

    print("KERNEL_OK")
</pallas_src>

<mosaic_0001>
module attributes {stable_mosaic.version = 11 : i64} {
  func.func @_copy_kernel(%arg0: i32, %arg1: memref<1x196xf32, #tpu.memory_space<vmem>>, %arg2: memref<1x196xf32, #tpu.memory_space<vmem>>) attributes {dimension_semantics = [#tpu.dimension_semantics<parallel>], iteration_bounds = array<i64: 1>, scalar_prefetch = 0 : i64, scratch_operands = 0 : i64, tpu.core_type = #tpu.core_type<tc>, window_params = [{transform_indices = @transform_0, window_bounds = array<i64: 1, 196>}, {transform_indices = @transform_1, window_bounds = array<i64: 1, 196>}]} {
    %c0 = arith.constant 0 : index
    %c0_0 = arith.constant 0 : index
    %0 = vector.load %arg1[%c0, %c0_0] : memref<1x196xf32, #tpu.memory_space<vmem>>, vector<1x196xf32>
    %c0_1 = arith.constant 0 : index
    %c0_2 = arith.constant 0 : index
    %1 = vector.load %arg2[%c0_1, %c0_2] : memref<1x196xf32, #tpu.memory_space<vmem>>, vector<1x196xf32>
    tpu.vector_store %arg2[%c0_1, %c0_2], %0 {strides = array<i32>} : memref<1x196xf32, #tpu.memory_space<vmem>>, vector<1x196xf32>,
    return
  }
  func.func @transform_0(%arg0: i32) -> (i32, i32) {
    %c0_i32 = arith.constant 0 : i32
    %c0_i32_0 = arith.constant 0 : i32
    return %arg0, %c0_i32 : i32, i32
  }
  func.func @transform_1(%arg0: i32) -> (i32, i32) {
    %c0_i32 = arith.constant 0 : i32
    %c0_i32_0 = arith.constant 0 : i32
    return %arg0, %c0_i32 : i32, i32
  }
}

</mosaic_0001>

<bundles_post_ra>
// kernel: tpu_custom_call.1
= control target key start
LH: loop header
LB: loop body
LE: loop exit
PB: predicated region body
PF: predicated region fallthrough
CT: control target
= control target key end

     0   :  { %6 = vsyncpa [#allocation3], 0  ;;  %s118_s0 = inlined_call_operand.hbm [shape: f32[1,196], index: 0, kind: input, shape index: {}]   ;;  %s119_s1 = inlined_call_operand.hbm [shape: f32[1,196], index: 1, kind: output, shape index: {}]  }
   0x1   :  { %7 = vsyncpa [#allocation4], 0  ;;  %s13_s8 = sshll.u32 %s118_s0, 4  ;;  %s100_s9 = smov [#allocation2]   ;;  %s14_s8 = int_to_ptr.hbm [resolvable:$true] %s13_s8 }
   0x2   :  { %s15_s10 = sshll.u32 %s100_s9, 4  ;;  %s16_s10 = int_to_ptr.vmem [resolvable:$true] %s15_s10 }
   0x3   :  { %18 = dma.hbm_to_vmem [thread:$0]  %s14_s8, 32, %s16_s10, [#allocation3]  }
   0x4   :  { %96 = dma.done.wait [#allocation3], 32  }
   0x5   :  { %97 = vsyncadd [#allocation3], 4294967264  ;;  %v24_v0 = vlaneseq  ;;  %s101_s11 = smov [#allocation5]   ;;  %s36_s15 = sshll.u32 %s119_s1, 4  ;;  %v23_v1 = vld [vmem:[#allocation2] sm:$0x3]  ;;  %s37_s15 = int_to_ptr.hbm [resolvable:$true] %s36_s15 }
   0x6   :  { %s34_s12 = sshll.u32 %s101_s11, 4  ;;  %s35_s12 = int_to_ptr.vmem [resolvable:$true] %s34_s12 }
   0x7   :  { %vm26_vm0 = vcmp.lt.s32.totalorder %v24_v0, 196 }
   0x8   :  { %28 = vst.msk [vmem:[#allocation5] sm:$0x3] %vm26_vm0, %v23_v1 }
   0x9   :  { %39 = dma.vmem_to_hbm [thread:$0]  %s35_s12, 32, %s37_s15, [#allocation4]  }
   0xa   :  { %98 = dma.done.wait [#allocation4], 32  }
   0xb   :  { %99 = vsyncadd [#allocation4], 4294967264 }
   0xc   :  { %44 = vsyncpa [#allocation3], 1 }
   0xd   :  { %45 = vsyncpa [#allocation4], 1 }

</bundles_post_ra>
